<compile_context>
chip_gen: v7x
topology: tpu7x:2x2x1
jax: 0.10.0
libtpu: 0.0.40
codegen_flags: <defaults>
</compile_context>

<pallas_src>
import jax
import jax.numpy as jnp
from jax.experimental import pallas as pl
from jax.experimental.pallas import tpu as pltpu


_SMALL_BYTES = 256 * 1024               # below this a grid is pure overhead
_TILE_TARGET_BYTES = 8 * 1024 * 1024    # per-step slab target: amortizes the
                                        # ~0.35us/step grid cost; 4 x 8 MiB of
                                        # double-buffered in+out still fits v7x's
                                        # 64 MiB VMEM with headroom
_FALLBACK_VMEM_CAP = 64 * 1024 * 1024   # conservative physical VMEM (v7x per-TC)


def _prod(xs):
    out = 1
    for v in xs:
        out *= int(v)
    return out


_VMEM_CAP_CACHE = [None]


def _vmem_capacity_bytes():
    """Physical VMEM of the current chip generation (conservative fallback)."""
    if _VMEM_CAP_CACHE[0] is None:
        try:
            _VMEM_CAP_CACHE[0] = int(pltpu.get_tpu_info().vmem_capacity_bytes)
        except Exception:  # query unavailable -> assume the tightest real chip
            _VMEM_CAP_CACHE[0] = _FALLBACK_VMEM_CAP
    return _VMEM_CAP_CACHE[0]


def _vmem_limit_bytes(block_bytes):
    """Scoped-VMEM request: double-buffered in + out blocks plus headroom,
    capped at 85% of the generation's physical VMEM (never 110 MiB on v7x)."""
    cap = int(0.85 * _vmem_capacity_bytes())
    want = 4 * int(block_bytes) + (4 << 20)
    return int(min(max(want, 32 << 20), cap))


def _rotation_split(inner_perm):
    """Return k if inner_perm == (k, k+1, ..., n-1, 0, ..., k-1), else None."""
    n = len(inner_perm)
    for k in range(1, n):
        if inner_perm == tuple(range(k, n)) + tuple(range(k)):
            return k
    return None


def _pick_tile(M, row_bytes, align):
    """Largest `align`-aligned tile of M whose per-step slab stays near the VMEM
    target.  The grid uses cdiv(M, tile), so awkward M (56, 197, primes) just
    gets one partial trailing block instead of degenerate divisor-only tiles."""
    if M <= align:
        return int(M)
    max_rows = max(int(_TILE_TARGET_BYTES // max(int(row_bytes), 1)), 1)
    if max_rows >= M:
        return int(M)
    # TODO(synk): if even `align` rows exceed the budget (huge untouched trailing
    # dims), split a second grid axis over one of those axes instead of leaning
    # on a larger vmem limit.
    return int(max((max_rows // align) * align, align))


def _trailing_identity_len(dims):
    """Length of the maximal suffix of axes that stay in place."""
    k = 0
    for j in range(len(dims) - 1, -1, -1):
        if dims[j] == j:
            k += 1
        else:
            break
    return k


# ---------------------------------------------------------------------------
# Kernels
# ---------------------------------------------------------------------------

def _copy_kernel(x_ref, o_ref):
    # Pure DMA reorder: the BlockSpec index maps do all the permuting.
    o_ref[...] = x_ref[...]


def _make_lane_dense_kernel(rot_k):
    """Rotation inner-perm: one 2-D XLU transpose of the (lead, rest) reshape,
    stored as a lane-dense (rows, flattened-trailing) block."""
    def kernel(x_ref, o_ref):
        slab = x_ref[...]
        lead = _prod(slab.shape[:rot_k])
        y = slab.reshape(lead, -1).T            # single 2-D XLU transpose
        # TODO(synk): fuse the transpose + regroup into one pltpu.einshape once
        # the grouped-equation lowering is verified; the reshape below costs an
        # extra VMEM relayout pass over the slab.
        o_ref[...] = y.reshape(o_ref.shape)     # dense (rows, flat-trailing) store
    return kernel


def _make_nd_kernel(inner_perm):
    """Non-rotation inner permutations: store the naturally-shaped block."""
    def kernel(x_ref, o_ref):
        o_ref[...] = jnp.transpose(x_ref[...], inner_perm)
    return kernel


def _make_whole_kernel(perm):
    def kernel(x_ref, o_ref):
        o_ref[...] = jnp.transpose(x_ref[...], perm)
    return kernel


# ---------------------------------------------------------------------------
# Paths
# ---------------------------------------------------------------------------

def _copy_permute(x, dims, out_shape_full, k_keep):
    """Permutations that keep a trailing suffix of axes in place: flatten that
    suffix into one lane-dense axis and let the BlockSpec index maps do the
    reordering (pure HBM traffic, zero XLU work, no masked stores)."""
    ndim = x.ndim
    n_lead = ndim - k_keep
    F = _prod(x.shape[n_lead:])
    itemsize = x.dtype.itemsize

    lead_out = tuple(out_shape_full[:n_lead])
    xf = x.reshape(x.shape[:n_lead] + (1, F))      # free: contiguous reshape
    pos = {dims[j]: j for j in range(n_lead)}      # input axis -> grid position

    t = _pick_tile(F, itemsize, 128)
    grid = lead_out + (pl.cdiv(F, t),)
    block = (None,) * n_lead + (1, t)              # (1, t): (8,128)-legal, lane dense

    def in_index_map(*g):
        return tuple(g[pos[ax]] for ax in range(n_lead)) + (0, g[-1])

    def out_index_map(*g):
        return tuple(g[:n_lead]) + (0, g[-1])

    flat = pl.pallas_call(
        _copy_kernel,
        out_shape=jax.ShapeDtypeStruct(lead_out + (1, F), x.dtype),
        grid=grid,
        in_specs=[pl.BlockSpec(block, in_index_map)],
        out_specs=pl.BlockSpec(block, out_index_map),
        compiler_params=pltpu.CompilerParams(
            dimension_semantics=("parallel",) * len(grid),
            vmem_limit_bytes=_vmem_limit_bytes(t * itemsize)),
    )(xf)
    return flat.reshape(out_shape_full)


def _gridded_permute(x, dims, out_shape_full):
    """dims[0] is a leading input axis (covers NCHW<->NHWC): grid over it plus
    cdiv tiles of the input axis that becomes output axis 1."""
    ndim = x.ndim
    p, a1 = dims[0], dims[1]
    remaining = [ax for ax in range(ndim) if ax != p]
    inner_perm = tuple(remaining.index(d) for d in dims[1:])
    rot_k = _rotation_split(inner_perm)

    B = x.shape[p]
    M = x.shape[a1]
    L = _prod(out_shape_full[2:])
    itemsize = x.dtype.itemsize
    slab_elems = _prod(x.shape[ax] for ax in remaining)
    row_bytes = (slab_elems // M) * itemsize

    # (8,128) rule on both the input block (axis a1) and the lane-dense output
    # block (t is its second-to-last dim).
    align = 128 if a1 == ndim - 1 else 8
    t = _pick_tile(M, row_bytes, align)
    grid = (B, pl.cdiv(M, t))

    in_block = tuple(None if ax == p else (t if ax == a1 else x.shape[ax])
                     for ax in range(ndim))

    def in_index_map(b, m):
        return tuple(b if ax == p else (m if ax == a1 else 0) for ax in range(ndim))

    params = pltpu.CompilerParams(
        dimension_semantics=("parallel", "parallel"),
        vmem_limit_bytes=_vmem_limit_bytes(t * row_bytes))

    if rot_k is not None:
        # Lane-dense store: Pallas sees the output as (B, M, L) -- byte identical
        # to the true output -- so each step writes a dense (t, L) slab instead
        # of masked stores with a tiny minor dim; reshaping back is free.
        flat = pl.pallas_call(
            _make_lane_dense_kernel(rot_k),
            out_shape=jax.ShapeDtypeStruct((B, M, L), x.dtype),
            grid=grid,
            in_specs=[pl.BlockSpec(in_block, in_index_map)],
            out_specs=pl.BlockSpec((None, t, L), lambda b, m: (b, m, 0)),
            compiler_params=params,
        )(x)
        return flat.reshape(out_shape_full)

    # Non-rotation inner permutation: naturally-shaped output block.  Static
    # choice on the permutation structure (no exception-driven fallback).
    out_block = (None, t) + tuple(out_shape_full[2:])

    def out_index_map(b, m):
        return (b, m) + (0,) * (ndim - 2)

    return pl.pallas_call(
        _make_nd_kernel(inner_perm),
        out_shape=jax.ShapeDtypeStruct(out_shape_full, x.dtype),
        grid=grid,
        in_specs=[pl.BlockSpec(in_block, in_index_map)],
        out_specs=pl.BlockSpec(out_block, out_index_map),
        compiler_params=params,
    )(x)


def _tiled_fallback_permute(x, dims, out_shape_full):
    """General fallback, gridded over dims[0] (the source of output axis 0):
    keeps large irregular permutes out of a single un-gridded block (VMEM
    ceiling; single-TC on v7x) while every block stays (8,128)-legal."""
    ndim = x.ndim
    g_ax = dims[0]
    itemsize = x.dtype.itemsize
    E = x.shape[g_ax]
    row_bytes = (x.size // E) * itemsize

    # Alignment: covers the in-block constraint when g_ax is one of the input's
    # last two axes and the out-block constraint on output axis 0 when ndim == 2.
    align = 128 if g_ax == ndim - 1 else 8
    t = _pick_tile(E, row_bytes, align)
    grid = (pl.cdiv(E, t),)

    in_block = tuple(t if ax == g_ax else x.shape[ax] for ax in range(ndim))
    out_block = (t,) + tuple(out_shape_full[1:])

    # TODO(synk): for tensors whose per-step slab still exceeds the VMEM budget
    # at the minimum aligned tile, add a second grid axis over another input
    # axis instead of relying on a larger vmem limit.
    return pl.pallas_call(
        _make_whole_kernel(dims),
        out_shape=jax.ShapeDtypeStruct(out_shape_full, x.dtype),
        grid=grid,
        in_specs=[pl.BlockSpec(
            in_block,
            lambda i: tuple(i if ax == g_ax else 0 for ax in range(ndim)))],
        out_specs=pl.BlockSpec(out_block, lambda i: (i,) + (0,) * (ndim - 1)),
        compiler_params=pltpu.CompilerParams(
            dimension_semantics=("parallel",),
            vmem_limit_bytes=_vmem_limit_bytes(t * row_bytes)),
    )(x)


def _whole_permute(x, dims, out_shape_full):
    """Tiny tensors only: one un-gridded VMEM block (grid overhead dominates)."""
    return pl.pallas_call(
        _make_whole_kernel(dims),
        out_shape=jax.ShapeDtypeStruct(out_shape_full, x.dtype),
        in_specs=[pl.BlockSpec(memory_space=pltpu.MemorySpace.VMEM)],
        out_specs=pl.BlockSpec(memory_space=pltpu.MemorySpace.VMEM),
    )(x)


# ---------------------------------------------------------------------------
# Dispatch
# ---------------------------------------------------------------------------

def permute_pallas(x, dims):
    """Equivalent of torch.permute(x, dims), computed with Pallas TPU kernels."""
    dims = tuple(int(d) for d in dims)
    ndim = x.ndim
    if sorted(dims) != list(range(ndim)):
        raise ValueError(f"dims {dims} is not a permutation of {tuple(range(ndim))}")
    out_shape_full = tuple(x.shape[d] for d in dims)

    # Identity: torch.permute returns a view; nothing to compute.
    if dims == tuple(range(ndim)):
        return x

    # Tiny tensors: the grid is pure per-step overhead -- one block is cheapest.
    if x.size * x.dtype.itemsize <= _SMALL_BYTES:
        return _whole_permute(x, dims, out_shape_full)

    # Trailing axes preserved: DMA-only reorder with a lane-dense flattened suffix.
    k_keep = _trailing_identity_len(dims)
    if k_keep >= 2:
        return _copy_permute(x, dims, out_shape_full, k_keep)

    # Leading-axis gridded transpose (covers the MViT NCHW <-> NHWC cases).
    if ndim >= 3 and dims[0] <= ndim - 3:
        return _gridded_permute(x, dims, out_shape_full)

    # Everything else: gridded fallback tiled over dims[0] (never un-gridded).
    return _tiled_fallback_permute(x, dims, out_shape_full)


class Permute:
    """Mirror of the PyTorch module: holds `dims`, applies them in forward."""

    def __init__(self, dims):
        self.dims = list(dims)

    def __call__(self, x):
        return permute_pallas(x, self.dims)


if __name__ == "__main__":
    key = jax.random.PRNGKey(0)
    k1, k2, k3, k4, k5, k6 = jax.random.split(key, 6)

    # 1) MViT NCHW -> NHWC at the module's nominal small size (tiny path).
    x = jax.random.normal(k1, (2, 4, 16, 16), dtype=jnp.float32)
    y = Permute([0, 2, 3, 1])(x)
    jax.block_until_ready(y)
    assert y.shape == (2, 16, 16, 4) and y.dtype == x.dtype
    assert jnp.array_equal(y, jnp.transpose(x, (0, 2, 3, 1)))

    # 2) NCHW -> NHWC large enough for the gridded lane-dense (rotation) path.
    x2 = jax.random.normal(k2, (2, 16, 56, 56), dtype=jnp.float32)   # ~392 KiB
    y2 = Permute([0, 2, 3, 1])(x2)
    jax.block_until_ready(y2)
    assert jnp.array_equal(y2, jnp.transpose(x2, (0, 2, 3, 1)))

    # 3) Reverse direction NHWC -> NCHW (gridded rotation, last input axis tiled).
    x3 = jax.random.normal(k3, (2, 56, 56, 16), dtype=jnp.float32)
    y3 = Permute([0, 3, 1, 2])(x3)
    jax.block_until_ready(y3)
    assert jnp.array_equal(y3, jnp.transpose(x3, (0, 3, 1, 2)))

    # 4) Attention-style head permute (gridded, non-rotation inner permutation).
    x4 = jax.random.normal(k4, (2, 64, 12, 64), dtype=jnp.float32)   # 384 KiB
    y4 = Permute([0, 2, 1, 3])(x4)
    jax.block_until_ready(y4)
    assert jnp.array_equal(y4, jnp.transpose(x4, (0, 2, 1, 3)))

    # 5) Trailing axes preserved: lane-dense DMA-only copy path.
    x5 = jax.random.normal(k5, (8, 16, 32, 64), dtype=jnp.float32)   # 1 MiB
    y5 = Permute([1, 0, 2, 3])(x5)
    jax.block_until_ready(y5)
    assert jnp.array_equal(y5, jnp.transpose(x5, (1, 0, 2, 3)))

    # 6) Irregular permutation above the tiny threshold: tiled general fallback.
    x6 = jax.random.normal(k6, (32, 16, 256), dtype=jnp.float32)     # 512 KiB
    y6 = Permute([2, 0, 1])(x6)
    jax.block_until_ready(y6)
    assert jnp.array_equal(y6, jnp.transpose(x6, (2, 0, 1)))

    # 7) Irregular + tiny: single-block path.
    y7 = Permute([2, 0, 3, 1])(x)
    jax.block_until_ready(y7)
    assert jnp.array_equal(y7, jnp.transpose(x, (2, 0, 3, 1)))

    # 8) Identity permutation returns the input (a view in torch).
    assert Permute([0, 1, 2, 3])(x) is x

    print("KERNEL_OK")
</pallas_src>

<mosaic_0001>
module attributes {stable_mosaic.version = 11 : i64} {
  func.func @kernel(%arg0: memref<2x4x16x16xf32, #tpu.memory_space<vmem>>, %arg1: memref<2x16x16x4xf32, #tpu.memory_space<vmem>>) attributes {dimension_semantics = [], scalar_prefetch = 0 : i64, scratch_operands = 0 : i64, tpu.core_type = #tpu.core_type<tc>} {
    %c0 = arith.constant 0 : index
    %c0_0 = arith.constant 0 : index
    %c0_1 = arith.constant 0 : index
    %c0_2 = arith.constant 0 : index
    %0 = vector.load %arg0[%c0, %c0_0, %c0_1, %c0_2] : memref<2x4x16x16xf32, #tpu.memory_space<vmem>>, vector<2x4x16x16xf32>
    %1 = tpu.transpose %0, [0, 2, 3, 1] : vector<2x4x16x16xf32> -> vector<2x16x16x4xf32>
    %c0_3 = arith.constant 0 : index
    %c0_4 = arith.constant 0 : index
    %c0_5 = arith.constant 0 : index
    %c0_6 = arith.constant 0 : index
    %2 = vector.load %arg1[%c0_3, %c0_4, %c0_5, %c0_6] : memref<2x16x16x4xf32, #tpu.memory_space<vmem>>, vector<2x16x16x4xf32>
    tpu.vector_store %arg1[%c0_3, %c0_4, %c0_5, %c0_6], %1 {strides = array<i32>} : memref<2x16x16x4xf32, #tpu.memory_space<vmem>>, vector<2x16x16x4xf32>,
    return
  }
}

</mosaic_0001>

<bundles_post_ra>
// kernel: tpu_custom_call.1
= control target key start
LH: loop header
LB: loop body
LE: loop exit
PB: predicated region body
PF: predicated region fallthrough
CT: control target
= control target key end

     0   :  { %6 = vsyncpa [#allocation3], 0  ;;  %s2778_s6 = smov [#allocation2]   ;;  %s3302_s0 = inlined_call_operand.hbm [shape: f32[2,4,16,16], index: 0, kind: input, shape index: {}]   ;;  %s3303_s1 = inlined_call_operand.vmem [shape: f32[2,16,16,4], index: 1, kind: output, shape index: {}]  }
   0x1   :  { %s12_s7 = sshll.u32 %s2778_s6, 4  ;;  %s2754_s10 = scalar_lea.hbm %s3302_s0, 2048  ;;  %s13_s7 = int_to_ptr.vmem [resolvable:$true] %s12_s7 }
   0x2   :  { %p2755_p0 = scmp.ne.s32.totalorder %s3302_s0, %s2754_s10  ;;  %p2758_p1 = scmp.lt.u32.totalorder %s2754_s10, %s3302_s0 }
   0x4   :  { %p2760_p2 = pnand %p2758_p1, %p2755_p0 }
   0x6   :  { %2763 = shalt.err (!%p2760_p2)
}
   0x7   :  { %s2764_s15 = scalar_lea.vmem %s13_s7, 2048  ;;  %p2769_p4 = scmp.lt.s32.totalorder %s13_s7, %s13_s7 }
   0x8   :  { %p2765_p3 = scmp.ne.s32.totalorder %s13_s7, %s2764_s15  ;;  %p2770_p5 = scmp.lt.s32.totalorder %s2764_s15, %s2764_s15 }
   0xa   :  { %p2771_p6 = por %p2770_p5, %p2769_p4 }
   0xc   :  { %p2772_p7 = pnand %p2771_p6, %p2765_p3 }
   0xe   :  { %2775 = shalt.err (!%p2772_p7)
}
   0xf   :  { %s2779_s16 = smov 128   ;;  %s2780_s17 = smov 8  }
  0x10   :  { %18 = dma.hbm_to_vmem [thread:$0]  %s3302_s0, 2048, %s13_s7, [#allocation3], %s2779_s16, %s2779_s16, %s2780_s17  }
  0x11   :  { %2776 = dma.done.wait [#allocation3], 2048  }
  0x12   :  { %2777 = vsyncadd [#allocation3], 4294965248  ;;  %v24_v0 = vld [vmem:[#allocation2 + $0x10] sm:$0xff]  ;;  %v22_v1 = vld [vmem:[#allocation2] sm:$0xff]  ;;  %v2781_v16 = vmov 1983009808   ;;  %v299_v18 = vlaneseq }
  0x13   :  { %70 = vxpose.xlu1.b32.start [1/2] (short) (narrow) %v24_v0, 16  ;;  %38 = vxpose.xlu0.b32.start [1/2] (short) (narrow) %v22_v1, 16  ;;  %v25_v2 = vld [vmem:[#allocation2 + $0x18] sm:$0xff]  ;;  %v23_v3 = vld [vmem:[#allocation2 + $0x8] sm:$0xff]  ;;  %v28_v4 = vld [vmem:[#allocation2 + $0x30] sm:$0xff]  ;;  %v297_v17 = vunpack.c.l.s4 %v2781_v16  ;;  %v2783_v47 = vmov 0.0  }
  0x14   :  { %v26_v5 = vld [vmem:[#allocation2 + $0x20] sm:$0xff]  ;;  %v29_v6 = vld [vmem:[#allocation2 + $0x38] sm:$0xff]  ;;  %v27_v7 = vld [vmem:[#allocation2 + $0x28] sm:$0xff]  ;;  %v300_v22 = vshrl.u32 %v299_v18, 7  ;;  %v2782_v25 = vmov 1934713408  }
  0x15   :  { %v32_v8 = vld [vmem:[#allocation2 + $0x50] sm:$0xff]  ;;  %v30_v9 = vld [vmem:[#allocation2 + $0x40] sm:$0xff]  ;;  %v33_v10 = vld [vmem:[#allocation2 + $0x58] sm:$0xff]  ;;  %v298_v21 = vunpack.c.0.s8 %v297_v17  ;;  %v329_v26 = vunpack.c.l.s4 %v2782_v25  ;;  %vm2678_vm0 = vcmask 31744  }
  0x16   :  { %v31_v11 = vld [vmem:[#allocation2 + $0x48] sm:$0xff]  ;;  %v36_v12 = vld [vmem:[#allocation2 + $0x70] sm:$0xff]  ;;  %v34_v13 = vld [vmem:[#allocation2 + $0x60] sm:$0xff] }
  0x17   :  { %71 = vxpose.xlu1.b32.end [2/2] (short) (narrow) %v25_v2, 16  ;;  %39 = vxpose.xlu0.b32.end [2/2] (short) (narrow) %v23_v3, 16  ;;  %v37_v14 = vld [vmem:[#allocation2 + $0x78] sm:$0xff]  ;;  %v35_v15 = vld [vmem:[#allocation2 + $0x68] sm:$0xff]  ;;  %v2810_v27 = vsub.s32 %v298_v21, %v300_v22  ;;  %v330_v30 = vunpack.c.0.s8 %v329_v26 }
  0x19   :  { %v2818_v39 = vsub.s32 %v330_v30, %v300_v22 }
  0x1b   :  { %134 = vxpose.xlu1.b32.start [1/2] (short) (narrow) %v28_v4, 16  ;;  %102 = vxpose.xlu0.b32.start [1/2] (short) (narrow) %v26_v5, 16 }
  0x1f   :  { %135 = vxpose.xlu1.b32.end [2/2] (short) (narrow) %v29_v6, 16  ;;  %103 = vxpose.xlu0.b32.end [2/2] (short) (narrow) %v27_v7, 16 }
  0x23   :  { %198 = vxpose.xlu1.b32.start [1/2] (short) (narrow) %v32_v8, 16  ;;  %166 = vxpose.xlu0.b32.start [1/2] (short) (narrow) %v30_v9, 16 }
  0x27   :  { %199 = vxpose.xlu1.b32.end [2/2] (short) (narrow) %v33_v10, 16  ;;  %167 = vxpose.xlu0.b32.end [2/2] (short) (narrow) %v31_v11, 16 }
  0x2b   :  { %262 = vxpose.xlu1.b32.start [1/2] (short) (narrow) %v36_v12, 16  ;;  %230 = vxpose.xlu0.b32.start [1/2] (short) (narrow) %v34_v13, 16 }
  0x2f   :  { %263 = vxpose.xlu1.b32.end [2/2] (short) (narrow) %v37_v14, 16  ;;  %231 = vxpose.xlu0.b32.end [2/2] (short) (narrow) %v35_v15, 16 }
  0x93   :  { %v86_v19 = vpop.trf.xlu1  ;;  %v54_v20 = vpop.trf.xlu0 }
  0x97   :  { %v2806_v23 = vpop.trf.xlu1  ;;  %v2808_v24 = vpop.trf.xlu0 }
  0x9b   :  { %v150_v28 = vpop.trf.xlu1  ;;  %v118_v29 = vpop.trf.xlu0 }
  0x9c   :  { %v310_v31 = vcombine.low %v86_v19, %v150_v28  ;;  %v294_v32 = vcombine.low %v54_v20, %v118_v29  ;;  %v311_v35 = vcombine.high %v86_v19, %v150_v28  ;;  %v295_v36 = vcombine.high %v54_v20, %v118_v29 }
  0x9e   :  { %v318_v33 = vrot.slane %v310_v31, %v2810_v27  ;;  %v302_v34 = vrot.slane %v294_v32, %v2810_v27  ;;  %v325_v42 = vrot.slane %v311_v35, %v2810_v27  ;;  %v309_v43 = vrot.slane %v295_v36, %v2810_v27 }
  0x9f   :  { %v2814_v37 = vpop.trf.xlu1  ;;  %v2816_v38 = vpop.trf.xlu0 }
  0xa0   :  { %v326_v40 = vcombine.low %v302_v34, %v318_v33  ;;  %v327_v41 = vcombine.high %v302_v34, %v318_v33  ;;  %v342_v52 = vcombine.low %v309_v43, %v325_v42  ;;  %v343_v59 = vcombine.high %v309_v43, %v325_v42 }
  0xa1   :  { %v378_v12 = vcombine.low %v2806_v23, %v2814_v37  ;;  %v362_v13 = vcombine.low %v2808_v24, %v2816_v38  ;;  %v379_v21 = vcombine.high %v2806_v23, %v2814_v37  ;;  %v363_v22 = vcombine.high %v2808_v24, %v2816_v38 }
  0xa2   :  { %v334_v44 = vrot.slane %v326_v40, %v2818_v39  ;;  %v341_v49 = vrot.slane %v327_v41, %v2818_v39  ;;  %v350_v54 = vrot.slane %v342_v52, %v2818_v39  ;;  %v357_v63 = vrot.slane %v343_v59, %v2818_v39 }
  0xa3   :  { %v214_v45 = vpop.trf.xlu1  ;;  %v182_v46 = vpop.trf.xlu0  ;;  %v386_v16 = vrot.slane %v378_v12, %v2810_v27  ;;  %v370_v17 = vrot.slane %v362_v13, %v2810_v27  ;;  %v393_v29 = vrot.slane %v379_v21, %v2810_v27  ;;  %v377_v30 = vrot.slane %v363_v22, %v2810_v27 }
  0xa4   :  { %566 = vxpose.xlu0.b32.start.end [1/1] (short) (narrow) %v334_v44, 16  ;;  %v358_v48 = vcombine.high %v334_v44, %v2783_v47  ;;  %v359_v53 = vcombine.high %v341_v49, %v2783_v47  ;;  %v360_v62 = vcombine.high %v350_v54, %v2783_v47  ;;  %v361_v4 = vcombine.high %v357_v63, %v2783_v47 }
  0xa5   :  { %v394_v20 = vcombine.low %v370_v17, %v386_v16  ;;  %v395_v28 = vcombine.high %v370_v17, %v386_v16  ;;  %v410_v24 = vcombine.low %v377_v30, %v393_v29  ;;  %v411_v38 = vcombine.high %v377_v30, %v393_v29 }
  0xa6   :  { %598 = vxpose.xlu1.b32.start.end [1/1] (short) (narrow) %v358_v48, 16 }
  0xa7   :  { %v2825_v50 = vpop.trf.xlu1  ;;  %v2827_v51 = vpop.trf.xlu0  ;;  %v402_v26 = vrot.slane %v394_v20, %v2818_v39  ;;  %v409_v23 = vrot.slane %v395_v28, %v2818_v39  ;;  %v418_v37 = vrot.slane %v410_v24, %v2818_v39  ;;  %v425_v43 = vrot.slane %v411_v38, %v2818_v39 }
  0xa9   :  { %630 = vxpose.xlu0.b32.start.end [1/1] (short) (narrow) %v341_v49, 16  ;;  %v426_v31 = vcombine.high %v402_v26, %v2783_v47  ;;  %v427_v36 = vcombine.high %v409_v23, %v2783_v47  ;;  %v428_v42 = vcombine.high %v418_v37, %v2783_v47  ;;  %v429_v48 = vcombine.high %v425_v43, %v2783_v47 }
  0xab   :  { %v278_v55 = vpop.trf.xlu1  ;;  %v246_v56 = vpop.trf.xlu0  ;;  %662 = vxpose.xlu1.b32.start.end [1/1] (short) (narrow) %v359_v53, 16 }
  0xac   :  { %v446_v57 = vcombine.low %v214_v45, %v278_v55  ;;  %v430_v58 = vcombine.low %v182_v46, %v246_v56  ;;  %v447_v1 = vcombine.high %v214_v45, %v278_v55  ;;  %v431_v2 = vcombine.high %v182_v46, %v246_v56 }
  0xae   :  { %v454_v60 = vrot.slane %v446_v57, %v2810_v27  ;;  %v438_v61 = vrot.slane %v430_v58, %v2810_v27  ;;  %694 = vxpose.xlu0.b32.start.end [1/1] (short) (narrow) %v350_v54, 16  ;;  %v461_v6 = vrot.slane %v447_v1, %v2810_v27  ;;  %v445_v7 = vrot.slane %v431_v2, %v2810_v27 }
  0xaf   :  { %v279_v32 = vpop.trf.xlu1  ;;  %v247_v33 = vpop.trf.xlu0 }
  0xb0   :  { %726 = vxpose.xlu1.b32.start.end [1/1] (short) (narrow) %v360_v62, 16  ;;  %v462_v0 = vcombine.low %v438_v61, %v454_v60  ;;  %v463_v5 = vcombine.high %v438_v61, %v454_v60  ;;  %v478_v10 = vcombine.low %v445_v7, %v461_v6  ;;  %v479_v15 = vcombine.high %v445_v7, %v461_v6 }
  0xb1   :  { %v514_v34 = vcombine.low %v2825_v50, %v279_v32  ;;  %v498_v35 = vcombine.low %v2827_v51, %v247_v33  ;;  %v515_v45 = vcombine.high %v2825_v50, %v279_v32  ;;  %v499_v46 = vcombine.high %v2827_v51, %v247_v33 }
  0xb2   :  { %v470_v3 = vrot.slane %v462_v0, %v2818_v39  ;;  %v477_v9 = vrot.slane %v463_v5, %v2818_v39  ;;  %v486_v14 = vrot.slane %v478_v10, %v2818_v39  ;;  %v493_v19 = vrot.slane %v479_v15, %v2818_v39 }
  0xb3   :  { %758 = vxpose.xlu0.b32.start.end [1/1] (short) (narrow) %v357_v63, 16  ;;  %v522_v40 = vrot.slane %v514_v34, %v2810_v27  ;;  %v506_v41 = vrot.slane %v498_v35, %v2810_v27  ;;  %v529_v53 = vrot.slane %v515_v45, %v2810_v27  ;;  %v513_v54 = vrot.slane %v499_v46, %v2810_v27 }
  0xb4   :  { %v494_v8 = vcombine.high %v470_v3, %v2783_v47  ;;  %v495_v11 = vcombine.high %v477_v9, %v2783_v47  ;;  %v496_v18 = vcombine.high %v486_v14, %v2783_v47  ;;  %v497_v25 = vcombine.high %v493_v19, %v2783_v47 }
  0xb5   :  { %790 = vxpose.xlu1.b32.start.end [1/1] (short) (narrow) %v361_v4, 16  ;;  %v530_v44 = vcombine.low %v506_v41, %v522_v40  ;;  %v531_v52 = vcombine.high %v506_v41, %v522_v40  ;;  %v546_v50 = vcombine.low %v513_v54, %v529_v53  ;;  %v547_v58 = vcombine.high %v513_v54, %v529_v53 }
  0xb7   :  { %v538_v49 = vrot.slane %v530_v44, %v2818_v39  ;;  %v545_v56 = vrot.slane %v531_v52, %v2818_v39  ;;  %v554_v57 = vrot.slane %v546_v50, %v2818_v39  ;;  %v561_v60 = vrot.slane %v547_v58, %v2818_v39 }
  0xb8   :  { %1078 = vxpose.xlu0.b32.start.end [1/1] (short) (narrow) %v470_v3, 16 }
  0xb9   :  { %v562_v55 = vcombine.high %v538_v49, %v2783_v47  ;;  %v563_v51 = vcombine.high %v545_v56, %v2783_v47  ;;  %v564_v59 = vcombine.high %v554_v57, %v2783_v47  ;;  %v565_v61 = vcombine.high %v561_v60, %v2783_v47 }
  0xba   :  { %1110 = vxpose.xlu1.b32.start.end [1/1] (short) (narrow) %v494_v8, 16 }
  0xbd   :  { %1142 = vxpose.xlu0.b32.start.end [1/1] (short) (narrow) %v477_v9, 16 }
  0xbf   :  { %1174 = vxpose.xlu1.b32.start.end [1/1] (short) (narrow) %v495_v11, 16 }
  0xc2   :  { %1206 = vxpose.xlu0.b32.start.end [1/1] (short) (narrow) %v486_v14, 16 }
  0xc4   :  { %1238 = vxpose.xlu1.b32.start.end [1/1] (short) (narrow) %v496_v18, 16 }
  0xc7   :  { %1270 = vxpose.xlu0.b32.start.end [1/1] (short) (narrow) %v493_v19, 16 }
  0xc9   :  { %1302 = vxpose.xlu1.b32.start.end [1/1] (short) (narrow) %v497_v25, 16 }
  0xcc   :  { %822 = vxpose.xlu0.b32.start.end [1/1] (short) (narrow) %v402_v26, 16 }
  0xce   :  { %854 = vxpose.xlu1.b32.start.end [1/1] (short) (narrow) %v426_v31, 16 }
  0xd1   :  { %886 = vxpose.xlu0.b32.start.end [1/1] (short) (narrow) %v409_v23, 16 }
  0xd3   :  { %918 = vxpose.xlu1.b32.start.end [1/1] (short) (narrow) %v427_v36, 16 }
  0xd6   :  { %950 = vxpose.xlu0.b32.start.end [1/1] (short) (narrow) %v418_v37, 16 }
  0xd8   :  { %982 = vxpose.xlu1.b32.start.end [1/1] (short) (narrow) %v428_v42, 16 }
  0xdb   :  { %1014 = vxpose.xlu0.b32.start.end [1/1] (short) (narrow) %v425_v43, 16 }
  0xdd   :  { %1046 = vxpose.xlu1.b32.start.end [1/1] (short) (narrow) %v429_v48, 16 }
  0xe0   :  { %1334 = vxpose.xlu0.b32.start.end [1/1] (short) (narrow) %v538_v49, 16 }
  0xe2   :  { %1366 = vxpose.xlu1.b32.start.end [1/1] (short) (narrow) %v562_v55, 16 }
  0xe5   :  { %1398 = vxpose.xlu0.b32.start.end [1/1] (short) (narrow) %v545_v56, 16 }
  0xe7   :  { %1430 = vxpose.xlu1.b32.start.end [1/1] (short) (narrow) %v563_v51, 16 }
  0xea   :  { %1462 = vxpose.xlu0.b32.start.end [1/1] (short) (narrow) %v554_v57, 16 }
  0xec   :  { %1494 = vxpose.xlu1.b32.start.end [1/1] (short) (narrow) %v564_v59, 16 }
  0xef   :  { %1526 = vxpose.xlu0.b32.start.end [1/1] (short) (narrow) %v561_v60, 16 }
  0xf1   :  { %1558 = vxpose.xlu1.b32.start.end [1/1] (short) (narrow) %v565_v61, 16 }
 0x124   :  { %v582_v62 = vpop.trf.xlu0 }
 0x126   :  { %v614_v63 = vpop.trf.xlu1 }
 0x128   :  { %v583_v0 = vpop.trf.xlu0 }
 0x12a   :  { %v615_v1 = vpop.trf.xlu1 }
 0x12c   :  { %v646_v2 = vpop.trf.xlu0 }
 0x12d   :  { %v1590_v9 = vcombine.low %v582_v62, %v646_v2  ;;  %v1591_v10 = vcombine.high %v582_v62, %v646_v2 }
 0x12e   :  { %v678_v3 = vpop.trf.xlu1 }
 0x12f   :  { %v1606_v6 = vcombine.low %v614_v63, %v678_v3  ;;  %v1607_v7 = vcombine.high %v614_v63, %v678_v3  ;;  %v1598_v14 = vrot.slane %v1590_v9, %v2810_v27  ;;  %v1605_v15 = vrot.slane %v1591_v10, %v2810_v27 }
 0x130   :  { %v647_v4 = vpop.trf.xlu0 }
 0x131   :  { %v1614_v12 = vrot.slane %v1606_v6, %v2810_v27  ;;  %v1621_v13 = vrot.slane %v1607_v7, %v2810_v27  ;;  %v1862_v16 = vcombine.low %v583_v0, %v647_v4  ;;  %v1863_v20 = vcombine.high %v583_v0, %v647_v4 }
 0x132   :  { %v679_v5 = vpop.trf.xlu1 }
 0x133   :  { %v1878_v17 = vcombine.low %v615_v1, %v679_v5  ;;  %v1654_v19 = vcombine.low %v1598_v14, %v1614_v12  ;;  %v1655_v21 = vcombine.high %v1598_v14, %v1614_v12  ;;  %v1670_v22 = vcombine.low %v1605_v15, %v1621_v13 }
 0x134   :  { %v710_v8 = vpop.trf.xlu0  ;;  %v1671_v25 = vcombine.high %v1605_v15, %v1621_v13  ;;  %v1879_v26 = vcombine.high %v615_v1, %v679_v5  ;;  %v1870_v31 = vrot.slane %v1862_v16, %v2810_v27  ;;  %v2890_v24 = vrot.slane %v1863_v20, %v2810_v27 }
 0x135   :  { %v1886_v32 = vrot.slane %v1878_v17, %v2810_v27  ;;  %v1662_v23 = vrot.slane %v1654_v19, %v2818_v39  ;;  %v1669_v36 = vrot.slane %v1655_v21, %v2818_v39  ;;  %v1678_v37 = vrot.slane %v1670_v22, %v2818_v39 }
 0x136   :  { %v742_v11 = vpop.trf.xlu1  ;;  %v1685_v38 = vrot.slane %v1671_v25, %v2818_v39  ;;  %v1893_v40 = vrot.slane %v1879_v26, %v2810_v27 }
 0x137   :  { %v1926_v46 = vcombine.low %v1870_v31, %v1886_v32  ;;  %v1927_v48 = vcombine.high %v1870_v31, %v1886_v32 }
 0x138   :  { %v711_v47 = vpop.trf.xlu0  ;;  %v1942_v51 = vcombine.low %v2890_v24, %v1893_v40  ;;  %v1943_v57 = vcombine.high %v2890_v24, %v1893_v40 }
 0x139   :  { %v1941_v19 = vrot.slane %v1927_v48, %v2818_v39 }
 0x13a   :  { %v743_v18 = vpop.trf.xlu1 }
 0x13c   :  { %v774_v28 = vpop.trf.xlu0 }
 0x13d   :  { %v1622_v29 = vcombine.low %v710_v8, %v774_v28  ;;  %v1623_v30 = vcombine.high %v710_v8, %v774_v28  ;;  %v1950_v28 = vrot.slane %v1942_v51, %v2818_v39 }
 0x13e   :  { %v806_v33 = vpop.trf.xlu1 }
 0x13f   :  { %v1638_v34 = vcombine.low %v742_v11, %v806_v33  ;;  %v1639_v35 = vcombine.high %v742_v11, %v806_v33  ;;  %v1630_v42 = vrot.slane %v1622_v29, %v2810_v27  ;;  %v1637_v43 = vrot.slane %v1623_v30, %v2810_v27 }
 0x140   :  { %v775_v41 = vpop.trf.xlu0  ;;  %v1957_v29 = vrot.slane %v1943_v57, %v2818_v39 }
 0x141   :  { %v1646_v44 = vrot.slane %v1638_v34, %v2810_v27  ;;  %v1653_v45 = vrot.slane %v1639_v35, %v2810_v27  ;;  %v1894_v49 = vcombine.low %v711_v47, %v775_v41  ;;  %v1895_v52 = vcombine.high %v711_v47, %v775_v41 }
 0x142   :  { %v807_v53 = vpop.trf.xlu1 }
 0x143   :  { %v1686_v54 = vcombine.low %v1630_v42, %v1646_v44  ;;  %v1687_v55 = vcombine.high %v1630_v42, %v1646_v44  ;;  %v1702_v56 = vcombine.low %v1637_v43, %v1653_v45  ;;  %v1703_v50 = vcombine.high %v1637_v43, %v1653_v45 }
 0x144   :  { %v1910_v58 = vcombine.low %v743_v18, %v807_v53  ;;  %v1911_v59 = vcombine.high %v743_v18, %v807_v53  ;;  %v2902_v60 = vpop.trf.xlu0  ;;  %v1902_v1 = vrot.slane %v1894_v49, %v2810_v27  ;;  %v1909_v2 = vrot.slane %v1895_v52, %v2810_v27 }
 0x145   :  { %v1694_v61 = vrot.slane %v1686_v54, %v2818_v39  ;;  %v1701_v62 = vrot.slane %v1687_v55, %v2818_v39  ;;  %v1710_v63 = vrot.slane %v1702_v56, %v2818_v39  ;;  %v1717_v0 = vrot.slane %v1703_v50, %v2818_v39 }
 0x146   :  { %v1918_v3 = vrot.slane %v1910_v58, %v2810_v27  ;;  %v1925_v4 = vrot.slane %v1911_v59, %v2810_v27  ;;  %v1126_v5 = vpop.trf.xlu1  ;;  %v1934_v18 = vrot.slane %v1926_v46, %v2818_v39 }
 0x147   :  { %v1718_v6 = vcombine.low %v1662_v23, %v1694_v61  ;;  %v1719_v7 = vcombine.high %v1662_v23, %v1694_v61  ;;  %v1720_v8 = vcombine.low %v1669_v36, %v1701_v62  ;;  %v1721_v9 = vcombine.high %v1669_v36, %v1701_v62 }
 0x148   :  { %v1722_v10 = vcombine.low %v1678_v37, %v1710_v63  ;;  %v1723_v11 = vcombine.high %v1678_v37, %v1710_v63  ;;  %v1724_v12 = vcombine.low %v1685_v38, %v1717_v0  ;;  %v1725_v13 = vcombine.high %v1685_v38, %v1717_v0  ;;  %v2912_v47 = vpop.trf.xlu0 }
 0x149   :  { %2679 = vst.msk [vmem:[%s3303_s1] sm:$0xff] %vm2678_vm0, %v1718_v6  ;;  %2681 = vst.msk [vmem:[%s3303_s1 + $0x10] sm:$0xff] %vm2678_vm0, %v1719_v7  ;;  %v1958_v14 = vcombine.low %v1902_v1, %v1918_v3  ;;  %v1959_v15 = vcombine.high %v1902_v1, %v1918_v3  ;;  %v1974_v16 = vcombine.low %v1909_v2, %v1925_v4 }
 0x14a   :  { %2683 = vst.msk [vmem:[%s3303_s1 + $0x20] sm:$0xff] %vm2678_vm0, %v1720_v8  ;;  %2685 = vst.msk [vmem:[%s3303_s1 + $0x30] sm:$0xff] %vm2678_vm0, %v1721_v9  ;;  %v1975_v17 = vcombine.high %v1909_v2, %v1925_v4  ;;  %v1127_v20 = vpop.trf.xlu1 }
 0x14b   :  { %2687 = vst.msk [vmem:[%s3303_s1 + $0x40] sm:$0xff] %vm2678_vm0, %v1722_v10  ;;  %2689 = vst.msk [vmem:[%s3303_s1 + $0x50] sm:$0xff] %vm2678_vm0, %v1723_v11  ;;  %v1966_v21 = vrot.slane %v1958_v14, %v2818_v39  ;;  %v1973_v22 = vrot.slane %v1959_v15, %v2818_v39  ;;  %v1982_v25 = vrot.slane %v1974_v16, %v2818_v39 }
 0x14c   :  { %2691 = vst.msk [vmem:[%s3303_s1 + $0x60] sm:$0xff] %vm2678_vm0, %v1724_v12  ;;  %2693 = vst.msk [vmem:[%s3303_s1 + $0x70] sm:$0xff] %vm2678_vm0, %v1725_v13  ;;  %v1989_v26 = vrot.slane %v1975_v17, %v2818_v39  ;;  %v1158_v30 = vpop.trf.xlu0 }
 0x14d   :  { %v1990_v31 = vcombine.low %v1934_v18, %v1966_v21  ;;  %v1991_v32 = vcombine.high %v1934_v18, %v1966_v21  ;;  %v1992_v33 = vcombine.low %v1941_v19, %v1973_v22  ;;  %v1993_v23 = vcombine.high %v1941_v19, %v1973_v22 }
 0x14e   :  { %v1994_v24 = vcombine.low %v1950_v28, %v1982_v25  ;;  %v1995_v34 = vcombine.high %v1950_v28, %v1982_v25  ;;  %v1996_v35 = vcombine.low %v1957_v29, %v1989_v26  ;;  %v1997_v36 = vcombine.high %v1957_v29, %v1989_v26  ;;  %v1190_v37 = vpop.trf.xlu1 }
 0x14f   :  { %2695 = vst.msk [vmem:[%s3303_s1 + $0x80] sm:$0xff] %vm2678_vm0, %v1990_v31  ;;  %2697 = vst.msk [vmem:[%s3303_s1 + $0x90] sm:$0xff] %vm2678_vm0, %v1991_v32  ;;  %v2150_v41 = vcombine.low %v1126_v5, %v1190_v37  ;;  %v2151_v42 = vcombine.high %v1126_v5, %v1190_v37  ;;  %v2134_v44 = vcombine.low %v2902_v60, %v1158_v30 }
 0x150   :  { %2699 = vst.msk [vmem:[%s3303_s1 + $0xa0] sm:$0xff] %vm2678_vm0, %v1992_v33  ;;  %2701 = vst.msk [vmem:[%s3303_s1 + $0xb0] sm:$0xff] %vm2678_vm0, %v1993_v23  ;;  %v1159_v38 = vpop.trf.xlu0  ;;  %v2135_v45 = vcombine.high %v2902_v60, %v1158_v30 }
 0x151   :  { %2703 = vst.msk [vmem:[%s3303_s1 + $0xc0] sm:$0xff] %vm2678_vm0, %v1994_v24  ;;  %2705 = vst.msk [vmem:[%s3303_s1 + $0xd0] sm:$0xff] %vm2678_vm0, %v1995_v34  ;;  %v2158_v48 = vrot.slane %v2150_v41, %v2810_v27  ;;  %v2165_v49 = vrot.slane %v2151_v42, %v2810_v27  ;;  %v2142_v53 = vrot.slane %v2134_v44, %v2810_v27 }
 0x152   :  { %2707 = vst.msk [vmem:[%s3303_s1 + $0xe0] sm:$0xff] %vm2678_vm0, %v1996_v35  ;;  %2709 = vst.msk [vmem:[%s3303_s1 + $0xf0] sm:$0xff] %vm2678_vm0, %v1997_v36  ;;  %v1191_v40 = vpop.trf.xlu1  ;;  %v2149_v54 = vrot.slane %v2135_v45, %v2810_v27  ;;  %v2406_v55 = vcombine.low %v2912_v47, %v1159_v38  ;;  %v2407_v57 = vcombine.high %v2912_v47, %v1159_v38 }
 0x153   :  { %v2422_v56 = vcombine.low %v1127_v20, %v1191_v40  ;;  %v2198_v51 = vcombine.low %v2142_v53, %v2158_v48  ;;  %v2199_v58 = vcombine.high %v2142_v53, %v2158_v48  ;;  %v2423_v61 = vcombine.high %v1127_v20, %v1191_v40 }
 0x154   :  { %v1222_v43 = vpop.trf.xlu0  ;;  %v2214_v59 = vcombine.low %v2149_v54, %v2165_v49  ;;  %v2215_v60 = vcombine.high %v2149_v54, %v2165_v49  ;;  %v2414_v1 = vrot.slane %v2406_v55, %v2810_v27  ;;  %v2998_v5 = vrot.slane %v2407_v57, %v2810_v27 }
 0x155   :  { %v2430_v2 = vrot.slane %v2422_v56, %v2810_v27  ;;  %v2206_v4 = vrot.slane %v2198_v51, %v2818_v39  ;;  %v2213_v8 = vrot.slane %v2199_v58, %v2818_v39  ;;  %v2437_v11 = vrot.slane %v2423_v61, %v2810_v27 }
 0x156   :  { %v1254_v46 = vpop.trf.xlu1  ;;  %v2222_v9 = vrot.slane %v2214_v59, %v2818_v39  ;;  %v2229_v10 = vrot.slane %v2215_v60, %v2818_v39 }
 0x157   :  { %v2470_v16 = vcombine.low %v2414_v1, %v2430_v2  ;;  %v2471_v17 = vcombine.high %v2414_v1, %v2430_v2  ;;  %v2486_v28 = vcombine.low %v2998_v5, %v2437_v11  ;;  %v2487_v29 = vcombine.high %v2998_v5, %v2437_v11 }
 0x158   :  { %v1223_v52 = vpop.trf.xlu0 }
 0x159   :  { %v2485_v51 = vrot.slane %v2471_v17, %v2818_v39 }
 0x15a   :  { %v1255_v50 = vpop.trf.xlu1 }
 0x15c   :  { %v1286_v62 = vpop.trf.xlu0 }
 0x15d   :  { %v2166_v63 = vcombine.low %v1222_v43, %v1286_v62  ;;  %v2167_v0 = vcombine.high %v1222_v43, %v1286_v62  ;;  %v2494_v62 = vrot.slane %v2486_v28, %v2818_v39 }
 0x15e   :  { %v1318_v3 = vpop.trf.xlu1 }
 0x15f   :  { %v2182_v6 = vcombine.low %v1254_v46, %v1318_v3  ;;  %v2183_v7 = vcombine.high %v1254_v46, %v1318_v3  ;;  %v2174_v13 = vrot.slane %v2166_v63, %v2810_v27  ;;  %v2181_v47 = vrot.slane %v2167_v0, %v2810_v27 }
 0x160   :  { %v1287_v12 = vpop.trf.xlu0  ;;  %v2501_v63 = vrot.slane %v2487_v29, %v2818_v39 }
 0x161   :  { %v2190_v14 = vrot.slane %v2182_v6, %v2810_v27  ;;  %v2197_v15 = vrot.slane %v2183_v7, %v2810_v27  ;;  %v2438_v18 = vcombine.low %v1223_v52, %v1287_v12  ;;  %v2439_v19 = vcombine.high %v1223_v52, %v1287_v12 }
 0x162   :  { %v1319_v20 = vpop.trf.xlu1 }
 0x163   :  { %v2230_v21 = vcombine.low %v2174_v13, %v2190_v14  ;;  %v2231_v22 = vcombine.high %v2174_v13, %v2190_v14  ;;  %v2246_v25 = vcombine.low %v2181_v47, %v2197_v15  ;;  %v2247_v26 = vcombine.high %v2181_v47, %v2197_v15 }
 0x164   :  { %v2454_v30 = vcombine.low %v1255_v50, %v1319_v20  ;;  %v2455_v31 = vcombine.high %v1255_v50, %v1319_v20  ;;  %v3010_v32 = vpop.trf.xlu0  ;;  %v2446_v35 = vrot.slane %v2438_v18, %v2810_v27  ;;  %v2453_v36 = vrot.slane %v2439_v19, %v2810_v27 }
 0x165   :  { %v2238_v33 = vrot.slane %v2230_v21, %v2818_v39  ;;  %v2245_v23 = vrot.slane %v2231_v22, %v2818_v39  ;;  %v2254_v24 = vrot.slane %v2246_v25, %v2818_v39  ;;  %v2261_v34 = vrot.slane %v2247_v26, %v2818_v39 }
 0x166   :  { %v2462_v37 = vrot.slane %v2454_v30, %v2810_v27  ;;  %v2469_v38 = vrot.slane %v2455_v31, %v2810_v27  ;;  %v870_v40 = vpop.trf.xlu1  ;;  %v2478_v50 = vrot.slane %v2470_v16, %v2818_v39 }
 0x167   :  { %v2262_v41 = vcombine.low %v2206_v4, %v2238_v33  ;;  %v2263_v42 = vcombine.high %v2206_v4, %v2238_v33  ;;  %v2264_v43 = vcombine.low %v2213_v8, %v2245_v23  ;;  %v2265_v44 = vcombine.high %v2213_v8, %v2245_v23 }
 0x168   :  { %v2266_v45 = vcombine.low %v2222_v9, %v2254_v24  ;;  %v2267_v46 = vcombine.high %v2222_v9, %v2254_v24  ;;  %v2268_v48 = vcombine.low %v2229_v10, %v2261_v34  ;;  %v2269_v49 = vcombine.high %v2229_v10, %v2261_v34  ;;  %v3020_v52 = vpop.trf.xlu0 }
 0x169   :  { %2711 = vst.msk [vmem:[%s3303_s1 + $0x100] sm:$0xff] %vm2678_vm0, %v2262_v41  ;;  %2713 = vst.msk [vmem:[%s3303_s1 + $0x110] sm:$0xff] %vm2678_vm0, %v2263_v42  ;;  %v2502_v53 = vcombine.low %v2446_v35, %v2462_v37  ;;  %v2503_v54 = vcombine.high %v2446_v35, %v2462_v37  ;;  %v2518_v55 = vcombine.low %v2453_v36, %v2469_v38 }
 0x16a   :  { %2715 = vst.msk [vmem:[%s3303_s1 + $0x120] sm:$0xff] %vm2678_vm0, %v2264_v43  ;;  %2717 = vst.msk [vmem:[%s3303_s1 + $0x130] sm:$0xff] %vm2678_vm0, %v2265_v44  ;;  %v2519_v56 = vcombine.high %v2453_v36, %v2469_v38  ;;  %v871_v57 = vpop.trf.xlu1 }
 0x16b   :  { %2719 = vst.msk [vmem:[%s3303_s1 + $0x140] sm:$0xff] %vm2678_vm0, %v2266_v45  ;;  %2721 = vst.msk [vmem:[%s3303_s1 + $0x150] sm:$0xff] %vm2678_vm0, %v2267_v46  ;;  %v2510_v58 = vrot.slane %v2502_v53, %v2818_v39  ;;  %v2517_v59 = vrot.slane %v2503_v54, %v2818_v39  ;;  %v2526_v60 = vrot.slane %v2518_v55, %v2818_v39 }
 0x16c   :  { %2723 = vst.msk [vmem:[%s3303_s1 + $0x160] sm:$0xff] %vm2678_vm0, %v2268_v48  ;;  %2725 = vst.msk [vmem:[%s3303_s1 + $0x170] sm:$0xff] %vm2678_vm0, %v2269_v49  ;;  %v2533_v61 = vrot.slane %v2519_v56, %v2818_v39  ;;  %v902_v0 = vpop.trf.xlu0 }
 0x16d   :  { %v2534_v1 = vcombine.low %v2478_v50, %v2510_v58  ;;  %v2535_v2 = vcombine.high %v2478_v50, %v2510_v58  ;;  %v2536_v3 = vcombine.low %v2485_v51, %v2517_v59  ;;  %v2537_v4 = vcombine.high %v2485_v51, %v2517_v59 }
 0x16e   :  { %v2538_v5 = vcombine.low %v2494_v62, %v2526_v60  ;;  %v2539_v6 = vcombine.high %v2494_v62, %v2526_v60  ;;  %v2540_v7 = vcombine.low %v2501_v63, %v2533_v61  ;;  %v2541_v8 = vcombine.high %v2501_v63, %v2533_v61  ;;  %v934_v9 = vpop.trf.xlu1 }
 0x16f   :  { %2727 = vst.msk [vmem:[%s3303_s1 + $0x180] sm:$0xff] %vm2678_vm0, %v2534_v1  ;;  %2729 = vst.msk [vmem:[%s3303_s1 + $0x190] sm:$0xff] %vm2678_vm0, %v2535_v2  ;;  %v1742_v12 = vcombine.low %v870_v40, %v934_v9  ;;  %v1743_v13 = vcombine.high %v870_v40, %v934_v9  ;;  %v1726_v14 = vcombine.low %v3010_v32, %v902_v0 }
 0x170   :  { %2731 = vst.msk [vmem:[%s3303_s1 + $0x1a0] sm:$0xff] %vm2678_vm0, %v2536_v3  ;;  %2733 = vst.msk [vmem:[%s3303_s1 + $0x1b0] sm:$0xff] %vm2678_vm0, %v2537_v4  ;;  %v903_v10 = vpop.trf.xlu0  ;;  %v1727_v15 = vcombine.high %v3010_v32, %v902_v0 }
 0x171   :  { %2735 = vst.msk [vmem:[%s3303_s1 + $0x1c0] sm:$0xff] %vm2678_vm0, %v2538_v5  ;;  %2737 = vst.msk [vmem:[%s3303_s1 + $0x1d0] sm:$0xff] %vm2678_vm0, %v2539_v6  ;;  %v1750_v17 = vrot.slane %v1742_v12, %v2810_v27  ;;  %v1757_v18 = vrot.slane %v1743_v13, %v2810_v27  ;;  %v1734_v20 = vrot.slane %v1726_v14, %v2810_v27 }
 0x172   :  { %2739 = vst.msk [vmem:[%s3303_s1 + $0x1e0] sm:$0xff] %vm2678_vm0, %v2540_v7  ;;  %2741 = vst.msk [vmem:[%s3303_s1 + $0x1f0] sm:$0xff] %vm2678_vm0, %v2541_v8  ;;  %v935_v11 = vpop.trf.xlu1  ;;  %v1741_v21 = vrot.slane %v1727_v15, %v2810_v27  ;;  %v1998_v22 = vcombine.low %v3020_v52, %v903_v10  ;;  %v1999_v29 = vcombine.high %v3020_v52, %v903_v10 }
 0x173   :  { %v2014_v25 = vcombine.low %v871_v57, %v935_v11  ;;  %v1790_v28 = vcombine.low %v1734_v20, %v1750_v17  ;;  %v1791_v30 = vcombine.high %v1734_v20, %v1750_v17  ;;  %v2015_v33 = vcombine.high %v871_v57, %v935_v11 }
 0x174   :  { %v966_v47 = vpop.trf.xlu0  ;;  %v1806_v31 = vcombine.low %v1741_v21, %v1757_v18  ;;  %v1807_v32 = vcombine.high %v1741_v21, %v1757_v18  ;;  %v2006_v35 = vrot.slane %v1998_v22, %v2810_v27  ;;  %v3106_v40 = vrot.slane %v1999_v29, %v2810_v27 }
 0x175   :  { %v2022_v36 = vrot.slane %v2014_v25, %v2810_v27  ;;  %v1798_v38 = vrot.slane %v1790_v28, %v2818_v39  ;;  %v1805_v43 = vrot.slane %v1791_v30, %v2818_v39  ;;  %v2029_v46 = vrot.slane %v2015_v33, %v2810_v27 }
 0x176   :  { %v998_v16 = vpop.trf.xlu1  ;;  %v1814_v44 = vrot.slane %v1806_v31, %v2818_v39  ;;  %v1821_v45 = vrot.slane %v1807_v32, %v2818_v39 }
 0x177   :  { %v2062_v55 = vcombine.low %v2006_v35, %v2022_v36  ;;  %v2063_v56 = vcombine.high %v2006_v35, %v2022_v36  ;;  %v2078_v62 = vcombine.low %v3106_v40, %v2029_v46  ;;  %v2079_v63 = vcombine.high %v3106_v40, %v2029_v46 }
 0x178   :  { %v967_v19 = vpop.trf.xlu0 }
 0x179   :  { %v2077_v28 = vrot.slane %v2063_v56, %v2818_v39 }
 0x17a   :  { %v999_v26 = vpop.trf.xlu1 }
 0x17c   :  { %v1030_v23 = vpop.trf.xlu0 }
 0x17d   :  { %v1758_v24 = vcombine.low %v966_v47, %v1030_v23  ;;  %v1759_v34 = vcombine.high %v966_v47, %v1030_v23  ;;  %v2086_v23 = vrot.slane %v2078_v62, %v2818_v39 }
 0x17e   :  { %v1062_v37 = vpop.trf.xlu1 }
 0x17f   :  { %v1774_v41 = vcombine.low %v998_v16, %v1062_v37  ;;  %v1775_v42 = vcombine.high %v998_v16, %v1062_v37  ;;  %v1766_v49 = vrot.slane %v1758_v24, %v2810_v27  ;;  %v1773_v52 = vrot.slane %v1759_v34, %v2810_v27 }
 0x180   :  { %v1031_v48 = vpop.trf.xlu0  ;;  %v2093_v24 = vrot.slane %v2079_v63, %v2818_v39 }
 0x181   :  { %v1782_v53 = vrot.slane %v1774_v41, %v2810_v27  ;;  %v1789_v54 = vrot.slane %v1775_v42, %v2810_v27  ;;  %v2030_v50 = vcombine.low %v967_v19, %v1031_v48  ;;  %v2031_v51 = vcombine.high %v967_v19, %v1031_v48 }
 0x182   :  { %v1063_v57 = vpop.trf.xlu1 }
 0x183   :  { %v1822_v58 = vcombine.low %v1766_v49, %v1782_v53  ;;  %v1823_v59 = vcombine.high %v1766_v49, %v1782_v53  ;;  %v1838_v60 = vcombine.low %v1773_v52, %v1789_v54  ;;  %v1839_v61 = vcombine.high %v1773_v52, %v1789_v54 }
 0x184   :  { %v2046_v0 = vcombine.low %v999_v26, %v1063_v57  ;;  %v2047_v1 = vcombine.high %v999_v26, %v1063_v57  ;;  %v3118_v2 = vpop.trf.xlu0  ;;  %v2038_v7 = vrot.slane %v2030_v50, %v2810_v27  ;;  %v2045_v8 = vrot.slane %v2031_v51, %v2810_v27 }
 0x185   :  { %v1830_v3 = vrot.slane %v1822_v58, %v2818_v39  ;;  %v1837_v4 = vrot.slane %v1823_v59, %v2818_v39  ;;  %v1846_v5 = vrot.slane %v1838_v60, %v2818_v39  ;;  %v1853_v6 = vrot.slane %v1839_v61, %v2818_v39 }
 0x186   :  { %v2054_v9 = vrot.slane %v2046_v0, %v2810_v27  ;;  %v2061_v10 = vrot.slane %v2047_v1, %v2810_v27  ;;  %v1382_v11 = vpop.trf.xlu1  ;;  %v2070_v26 = vrot.slane %v2062_v55, %v2818_v39 }
 0x187   :  { %v1854_v12 = vcombine.low %v1798_v38, %v1830_v3  ;;  %v1855_v13 = vcombine.high %v1798_v38, %v1830_v3  ;;  %v1856_v47 = vcombine.low %v1805_v43, %v1837_v4  ;;  %v1857_v14 = vcombine.high %v1805_v43, %v1837_v4 }
 0x188   :  { %v1858_v15 = vcombine.low %v1814_v44, %v1846_v5  ;;  %v1859_v16 = vcombine.high %v1814_v44, %v1846_v5  ;;  %v1860_v17 = vcombine.low %v1821_v45, %v1853_v6  ;;  %v1861_v18 = vcombine.high %v1821_v45, %v1853_v6  ;;  %v3128_v19 = vpop.trf.xlu0 }
 0x189   :  { %2680 = vst.msk [vmem:[%s3303_s1 + $0x8] sm:$0xff] %vm2678_vm0, %v1854_v12  ;;  %2682 = vst.msk [vmem:[%s3303_s1 + $0x18] sm:$0xff] %vm2678_vm0, %v1855_v13  ;;  %v2094_v20 = vcombine.low %v2038_v7, %v2054_v9  ;;  %v2095_v21 = vcombine.high %v2038_v7, %v2054_v9  ;;  %v2110_v22 = vcombine.low %v2045_v8, %v2061_v10 }
 0x18a   :  { %2684 = vst.msk [vmem:[%s3303_s1 + $0x28] sm:$0xff] %vm2678_vm0, %v1856_v47  ;;  %2686 = vst.msk [vmem:[%s3303_s1 + $0x38] sm:$0xff] %vm2678_vm0, %v1857_v14  ;;  %v2111_v25 = vcombine.high %v2045_v8, %v2061_v10  ;;  %v1383_v29 = vpop.trf.xlu1 }
 0x18b   :  { %2688 = vst.msk [vmem:[%s3303_s1 + $0x48] sm:$0xff] %vm2678_vm0, %v1858_v15  ;;  %2690 = vst.msk [vmem:[%s3303_s1 + $0x58] sm:$0xff] %vm2678_vm0, %v1859_v16  ;;  %v2102_v30 = vrot.slane %v2094_v20, %v2818_v39  ;;  %v2109_v31 = vrot.slane %v2095_v21, %v2818_v39  ;;  %v2118_v32 = vrot.slane %v2110_v22, %v2818_v39 }
 0x18c   :  { %2692 = vst.msk [vmem:[%s3303_s1 + $0x68] sm:$0xff] %vm2678_vm0, %v1860_v17  ;;  %2694 = vst.msk [vmem:[%s3303_s1 + $0x78] sm:$0xff] %vm2678_vm0, %v1861_v18  ;;  %v2125_v33 = vrot.slane %v2111_v25, %v2818_v39  ;;  %v1414_v34 = vpop.trf.xlu0 }
 0x18d   :  { %v2126_v35 = vcombine.low %v2070_v26, %v2102_v30  ;;  %v2127_v36 = vcombine.high %v2070_v26, %v2102_v30  ;;  %v2128_v37 = vcombine.low %v2077_v28, %v2109_v31  ;;  %v2129_v38 = vcombine.high %v2077_v28, %v2109_v31 }
 0x18e   :  { %v2130_v40 = vcombine.low %v2086_v23, %v2118_v32  ;;  %v2131_v41 = vcombine.high %v2086_v23, %v2118_v32  ;;  %v2132_v42 = vcombine.low %v2093_v24, %v2125_v33  ;;  %v2133_v43 = vcombine.high %v2093_v24, %v2125_v33  ;;  %v1446_v44 = vpop.trf.xlu1 }
 0x18f   :  { %2696 = vst.msk [vmem:[%s3303_s1 + $0x88] sm:$0xff] %vm2678_vm0, %v2126_v35  ;;  %2698 = vst.msk [vmem:[%s3303_s1 + $0x98] sm:$0xff] %vm2678_vm0, %v2127_v36  ;;  %v2286_v48 = vcombine.low %v1382_v11, %v1446_v44  ;;  %v2287_v49 = vcombine.high %v1382_v11, %v1446_v44  ;;  %v2270_v53 = vcombine.low %v3118_v2, %v1414_v34 }
 0x190   :  { %2700 = vst.msk [vmem:[%s3303_s1 + $0xa8] sm:$0xff] %vm2678_vm0, %v2128_v37  ;;  %2702 = vst.msk [vmem:[%s3303_s1 + $0xb8] sm:$0xff] %vm2678_vm0, %v2129_v38  ;;  %v1415_v45 = vpop.trf.xlu0  ;;  %v2271_v54 = vcombine.high %v3118_v2, %v1414_v34 }
 0x191   :  { %2704 = vst.msk [vmem:[%s3303_s1 + $0xc8] sm:$0xff] %vm2678_vm0, %v2130_v40  ;;  %2706 = vst.msk [vmem:[%s3303_s1 + $0xd8] sm:$0xff] %vm2678_vm0, %v2131_v41  ;;  %v2294_v56 = vrot.slane %v2286_v48, %v2810_v27  ;;  %v2301_v50 = vrot.slane %v2287_v49, %v2810_v27  ;;  %v2278_v57 = vrot.slane %v2270_v53, %v2810_v27 }
 0x192   :  { %2708 = vst.msk [vmem:[%s3303_s1 + $0xe8] sm:$0xff] %vm2678_vm0, %v2132_v42  ;;  %2710 = vst.msk [vmem:[%s3303_s1 + $0xf8] sm:$0xff] %vm2678_vm0, %v2133_v43  ;;  %v1447_v46 = vpop.trf.xlu1  ;;  %v2285_v58 = vrot.slane %v2271_v54, %v2810_v27  ;;  %v2542_v59 = vcombine.low %v3128_v19, %v1415_v45  ;;  %v2543_v63 = vcombine.high %v3128_v19, %v1415_v45 }
 0x193   :  { %v2558_v60 = vcombine.low %v1383_v29, %v1447_v46  ;;  %v2334_v62 = vcombine.low %v2278_v57, %v2294_v56  ;;  %v2335_v0 = vcombine.high %v2278_v57, %v2294_v56  ;;  %v2559_v3 = vcombine.high %v1383_v29, %v1447_v46 }
 0x194   :  { %v1478_v52 = vpop.trf.xlu0  ;;  %v2350_v1 = vcombine.low %v2285_v58, %v2301_v50  ;;  %v2351_v2 = vcombine.high %v2285_v58, %v2301_v50  ;;  %v2550_v7 = vrot.slane %v2542_v59, %v2810_v27  ;;  %v2557_v11 = vrot.slane %v2543_v63, %v2810_v27 }
 0x195   :  { %v2566_v8 = vrot.slane %v2558_v60, %v2810_v27  ;;  %v2342_v10 = vrot.slane %v2334_v62, %v2818_v39  ;;  %v2349_v47 = vrot.slane %v2335_v0, %v2818_v39  ;;  %v2573_v16 = vrot.slane %v2559_v3, %v2810_v27 }
 0x196   :  { %v1510_v55 = vpop.trf.xlu1  ;;  %v2358_v14 = vrot.slane %v2350_v1, %v2818_v39  ;;  %v2365_v15 = vrot.slane %v2351_v2, %v2818_v39 }
 0x197   :  { %v2606_v22 = vcombine.low %v2550_v7, %v2566_v8  ;;  %v2607_v25 = vcombine.high %v2550_v7, %v2566_v8  ;;  %v2622_v23 = vcombine.low %v2557_v11, %v2573_v16  ;;  %v2623_v24 = vcombine.high %v2557_v11, %v2573_v16 }
 0x198   :  { %v1479_v51 = vpop.trf.xlu0 }
 0x199   :  { %v2614_v57 = vrot.slane %v2606_v22, %v2818_v39  ;;  %v2621_v58 = vrot.slane %v2607_v25, %v2818_v39  ;;  %v2630_v63 = vrot.slane %v2622_v23, %v2818_v39  ;;  %v2637_v0 = vrot.slane %v2623_v24, %v2818_v39 }
 0x19a   :  { %v1511_v61 = vpop.trf.xlu1 }
 0x19c   :  { %v1542_v4 = vpop.trf.xlu0 }
 0x19d   :  { %v2302_v5 = vcombine.low %v1478_v52, %v1542_v4  ;;  %v2303_v6 = vcombine.high %v1478_v52, %v1542_v4 }
 0x19e   :  { %v1574_v9 = vpop.trf.xlu1 }
 0x19f   :  { %v2318_v12 = vcombine.low %v1510_v55, %v1574_v9  ;;  %v2319_v13 = vcombine.high %v1510_v55, %v1574_v9  ;;  %v2310_v18 = vrot.slane %v2302_v5, %v2810_v27  ;;  %v2317_v19 = vrot.slane %v2303_v6, %v2810_v27 }
 0x1a0   :  { %v1543_v17 = vpop.trf.xlu0 }
 0x1a1   :  { %v2326_v20 = vrot.slane %v2318_v12, %v2810_v27  ;;  %v2333_v21 = vrot.slane %v2319_v13, %v2810_v27  ;;  %v2574_v26 = vcombine.low %v1479_v51, %v1543_v17  ;;  %v2575_v28 = vcombine.high %v1479_v51, %v1543_v17 }
 0x1a2   :  { %v1575_v29 = vpop.trf.xlu1 }
 0x1a3   :  { %v2366_v30 = vcombine.low %v2310_v18, %v2326_v20  ;;  %v2367_v31 = vcombine.high %v2310_v18, %v2326_v20  ;;  %v2382_v32 = vcombine.low %v2317_v19, %v2333_v21  ;;  %v2383_v33 = vcombine.high %v2317_v19, %v2333_v21 }
 0x1a4   :  { %v2590_v34 = vcombine.low %v1511_v61, %v1575_v29  ;;  %v2591_v35 = vcombine.high %v1511_v61, %v1575_v29  ;;  %v2582_v41 = vrot.slane %v2574_v26, %v2810_v27  ;;  %v2589_v42 = vrot.slane %v2575_v28, %v2810_v27 }
 0x1a5   :  { %v2374_v36 = vrot.slane %v2366_v30, %v2818_v39  ;;  %v2381_v37 = vrot.slane %v2367_v31, %v2818_v39  ;;  %v2390_v38 = vrot.slane %v2382_v32, %v2818_v39  ;;  %v2397_v40 = vrot.slane %v2383_v33, %v2818_v39 }
 0x1a6   :  { %v2598_v43 = vrot.slane %v2590_v34, %v2810_v27  ;;  %v2605_v44 = vrot.slane %v2591_v35, %v2810_v27 }
 0x1a7   :  { %v2398_v45 = vcombine.low %v2342_v10, %v2374_v36  ;;  %v2399_v46 = vcombine.high %v2342_v10, %v2374_v36  ;;  %v2400_v48 = vcombine.low %v2349_v47, %v2381_v37  ;;  %v2401_v49 = vcombine.high %v2349_v47, %v2381_v37 }
 0x1a8   :  { %v2402_v52 = vcombine.low %v2358_v14, %v2390_v38  ;;  %v2403_v53 = vcombine.high %v2358_v14, %v2390_v38  ;;  %v2404_v54 = vcombine.low %v2365_v15, %v2397_v40  ;;  %v2405_v55 = vcombine.high %v2365_v15, %v2397_v40 }
 0x1a9   :  { %2712 = vst.msk [vmem:[%s3303_s1 + $0x108] sm:$0xff] %vm2678_vm0, %v2398_v45  ;;  %2714 = vst.msk [vmem:[%s3303_s1 + $0x118] sm:$0xff] %vm2678_vm0, %v2399_v46  ;;  %v2638_v27 = vcombine.low %v2582_v41, %v2598_v43  ;;  %v2639_v56 = vcombine.high %v2582_v41, %v2598_v43  ;;  %v2654_v50 = vcombine.low %v2589_v42, %v2605_v44 }
 0x1aa   :  { %2716 = vst.msk [vmem:[%s3303_s1 + $0x128] sm:$0xff] %vm2678_vm0, %v2400_v48  ;;  %2718 = vst.msk [vmem:[%s3303_s1 + $0x138] sm:$0xff] %vm2678_vm0, %v2401_v49  ;;  %v2655_v51 = vcombine.high %v2589_v42, %v2605_v44 }
 0x1ab   :  { %2720 = vst.msk [vmem:[%s3303_s1 + $0x148] sm:$0xff] %vm2678_vm0, %v2402_v52  ;;  %2722 = vst.msk [vmem:[%s3303_s1 + $0x158] sm:$0xff] %vm2678_vm0, %v2403_v53  ;;  %v2646_v59 = vrot.slane %v2638_v27, %v2818_v39  ;;  %v2653_v60 = vrot.slane %v2639_v56, %v2818_v39  ;;  %v2662_v61 = vrot.slane %v2654_v50, %v2818_v39 }
 0x1ac   :  { %2724 = vst.msk [vmem:[%s3303_s1 + $0x168] sm:$0xff] %vm2678_vm0, %v2404_v54  ;;  %2726 = vst.msk [vmem:[%s3303_s1 + $0x178] sm:$0xff] %vm2678_vm0, %v2405_v55  ;;  %v2669_v62 = vrot.slane %v2655_v51, %v2818_v39 }
 0x1ad   :  { %v2670_v1 = vcombine.low %v2614_v57, %v2646_v59  ;;  %v2671_v2 = vcombine.high %v2614_v57, %v2646_v59  ;;  %v2672_v3 = vcombine.low %v2621_v58, %v2653_v60  ;;  %v2673_v4 = vcombine.high %v2621_v58, %v2653_v60 }
 0x1ae   :  { %v2674_v5 = vcombine.low %v2630_v63, %v2662_v61  ;;  %v2675_v6 = vcombine.high %v2630_v63, %v2662_v61  ;;  %v2676_v7 = vcombine.low %v2637_v0, %v2669_v62  ;;  %v2677_v8 = vcombine.high %v2637_v0, %v2669_v62 }
 0x1af   :  { %2728 = vst.msk [vmem:[%s3303_s1 + $0x188] sm:$0xff] %vm2678_vm0, %v2670_v1  ;;  %2730 = vst.msk [vmem:[%s3303_s1 + $0x198] sm:$0xff] %vm2678_vm0, %v2671_v2 }
 0x1b0   :  { %2732 = vst.msk [vmem:[%s3303_s1 + $0x1a8] sm:$0xff] %vm2678_vm0, %v2672_v3  ;;  %2734 = vst.msk [vmem:[%s3303_s1 + $0x1b8] sm:$0xff] %vm2678_vm0, %v2673_v4 }
 0x1b1   :  { %2736 = vst.msk [vmem:[%s3303_s1 + $0x1c8] sm:$0xff] %vm2678_vm0, %v2674_v5  ;;  %2738 = vst.msk [vmem:[%s3303_s1 + $0x1d8] sm:$0xff] %vm2678_vm0, %v2675_v6 }
 0x1b2   :  { %2740 = vst.msk [vmem:[%s3303_s1 + $0x1e8] sm:$0xff] %vm2678_vm0, %v2676_v7  ;;  %2742 = vst.msk [vmem:[%s3303_s1 + $0x1f8] sm:$0xff] %vm2678_vm0, %v2677_v8 }
 0x1b3   :  { %2747 = vsyncpa [#allocation3], 1 }

</bundles_post_ra>
